<compile_context>
chip_gen: v5e
topology: v5e:2x2
jax: 0.10.0
libtpu: 0.0.40
codegen_flags: <defaults>
</compile_context>

<pallas_src>
import jax
import jax.numpy as jnp
from jax.experimental import pallas as pl
from jax.experimental.pallas import tpu as pltpu


def _pick_hw_tile(hw, cap=2048):
    """Largest multiple-of-128 divisor of hw that is <= cap; fall back to full hw."""
    start = min(cap, hw)
    start -= start % 128
    for t in range(start, 127, -128):
        if hw % t == 0:
            return t
    return hw


def _reg_loss_kernel(ind_ref,      # VMEM (1, 1, K_pad) int32
                     mask_ref,     # VMEM (1, 1, K_pad) float32
                     target_ref,   # VMEM (1, C, K_pad) float32  (target transposed: K on lanes)
                     feat_ref,     # VMEM (1, C, HW_TILE)        (NCHW feature map, reshaped)
                     out_ref,      # VMEM (1, 2, K_pad) float32  (row 0: loss lanes, row 1: mask)
                     acc_ref):     # VMEM (C, K_pad) float32     (gathered-pred accumulator)
    hw = pl.program_id(1)
    n_hw = pl.num_programs(1)
    hw_tile = feat_ref.shape[-1]
    k_pad = acc_ref.shape[-1]

    @pl.when(hw == 0)
    def _():
        acc_ref[...] = jnp.zeros_like(acc_ref)

    # In-kernel gather of this HW chunk via exact one-hot matmul:
    #   acc[c, k] += sum_hw feat[c, hw] * (hw == ind[k])
    base = hw * hw_tile
    pos = jax.lax.broadcasted_iota(jnp.int32, (hw_tile, k_pad), 0) + base
    idx = ind_ref[0]                                            # (1, K_pad) int32
    onehot = (pos == idx).astype(jnp.float32)                   # (HW_TILE, K_pad)
    feat_tile = feat_ref[0].astype(jnp.float32)                 # (C, HW_TILE)
    acc_ref[...] += jnp.dot(feat_tile, onehot,
                            preferred_element_type=jnp.float32)

    @pl.when(hw == n_hw - 1)
    def _():
        m = mask_ref[0].astype(jnp.float32)                     # (1, K_pad)
        pred = acc_ref[...] * m                                 # (C, K_pad)
        gt = target_ref[0].astype(jnp.float32) * m              # (C, K_pad)
        d = pred - gt
        ad = jnp.abs(d)
        # smooth_l1_loss, beta=1, reduction='sum' (size_average=False)
        elem = jnp.where(ad < 1.0, 0.5 * d * d, ad - 0.5)
        loss_lanes = jnp.sum(elem, axis=0, keepdims=True)       # (1, K_pad)
        out_ref[...] = jnp.concatenate([loss_lanes, m], axis=0)[None]


def reg_loss(output_nchw, mask, ind, target):
    """Pallas implementation of CenterNet RegLoss.forward."""
    B, C, H, W = output_nchw.shape
    K = ind.shape[1]
    HW = H * W

    K_pad = pl.cdiv(K, 128) * 128
    HW_TILE = _pick_hw_tile(HW)
    n_hw = HW // HW_TILE

    # Free reshape of NCHW -> (B, C, H*W); no transpose, no extra HBM traffic.
    feat = output_nchw.reshape(B, C, HW)

    # Lane-dense (K on lanes), zero-padded auxiliary inputs.  Padded slots carry
    # mask == 0 so they contribute nothing to either reduction.
    ind_i = jnp.clip(ind.astype(jnp.int32), 0, HW - 1)          # bounds-safe gather
    ind_v = jnp.pad(ind_i, ((0, 0), (0, K_pad - K))).reshape(B, 1, K_pad)
    mask_v = jnp.pad(mask.astype(jnp.float32),
                     ((0, 0), (0, K_pad - K))).reshape(B, 1, K_pad)
    target_t = jnp.pad(jnp.transpose(target.astype(jnp.float32), (0, 2, 1)),
                       ((0, 0), (0, 0), (0, K_pad - K)))        # (B, C, K_pad)

    grid_spec = pltpu.PrefetchScalarGridSpec(
        num_scalar_prefetch=0,
        grid=(B, n_hw),
        in_specs=[
            pl.BlockSpec((1, 1, K_pad), lambda b, hw: (b, 0, 0)),
            pl.BlockSpec((1, 1, K_pad), lambda b, hw: (b, 0, 0)),
            pl.BlockSpec((1, C, K_pad), lambda b, hw: (b, 0, 0)),
            pl.BlockSpec((1, C, HW_TILE), lambda b, hw: (b, 0, hw)),
        ],
        out_specs=pl.BlockSpec((1, 2, K_pad), lambda b, hw: (b, 0, 0)),
        scratch_shapes=[pltpu.VMEM((C, K_pad), jnp.float32)],
    )

    partials = pl.pallas_call(
        _reg_loss_kernel,
        grid_spec=grid_spec,
        out_shape=jax.ShapeDtypeStruct((B, 2, K_pad), jnp.float32),
        compiler_params=pltpu.CompilerParams(
            dimension_semantics=("parallel", "arbitrary")),
    )(ind_v, mask_v, target_t, feat)

    # Tiny final reduction + divide (per review: keep it out of the kernel so the
    # batch axis can shard across TensorCores).
    loss_sum = jnp.sum(partials[:, 0, :])
    num = jnp.sum(partials[:, 1, :])
    return loss_sum / (num + 0.0001)


def reg_loss_ref(output_nchw, mask, ind, target):
    """Pure-JAX reference mirroring the PyTorch code."""
    B, C, H, W = output_nchw.shape
    feat = jnp.transpose(output_nchw, (0, 2, 3, 1)).reshape(B, H * W, C)
    pred = jnp.take_along_axis(feat, ind[:, :, None].astype(jnp.int32), axis=1)
    m = mask.astype(jnp.float32)
    num = m.sum()
    mexp = m[:, :, None]
    d = pred * mexp - target.astype(jnp.float32) * mexp
    ad = jnp.abs(d)
    loss = jnp.where(ad < 1.0, 0.5 * d * d, ad - 0.5).sum()
    return loss / (num + 0.0001)


if __name__ == "__main__":
    key = jax.random.PRNGKey(0)
    k1, k2, k3, k4 = jax.random.split(key, 4)

    B, C, H, W, K = 2, 4, 16, 16, 8

    output = jax.random.normal(k1, (B, C, H, W), dtype=jnp.float32)
    target = jax.random.normal(k2, (B, K, C), dtype=jnp.float32)
    ind = jax.random.randint(k3, (B, K), 0, H * W, dtype=jnp.int32)
    mask = (jax.random.uniform(k4, (B, K)) > 0.3).astype(jnp.int32)

    loss = reg_loss(output, mask, ind, target)
    loss = jax.block_until_ready(loss)

    ref = reg_loss_ref(output, mask, ind, target)
    assert jnp.allclose(loss, ref, rtol=1e-4, atol=1e-5), (loss, ref)

    print("KERNEL_OK")
</pallas_src>

<mosaic_0001>
module attributes {stable_mosaic.version = 11 : i64} {
  func.func @_reg_loss_kernel(%arg0: i32, %arg1: i32, %arg2: memref<1x1x128xi32, #tpu.memory_space<vmem>>, %arg3: memref<1x1x128xf32, #tpu.memory_space<vmem>>, %arg4: memref<1x4x128xf32, #tpu.memory_space<vmem>>, %arg5: memref<1x4x256xf32, #tpu.memory_space<vmem>>, %arg6: memref<1x2x128xf32, #tpu.memory_space<vmem>>, %arg7: memref<4x128xf32, #tpu.memory_space<vmem>>) attributes {dimension_semantics = [#tpu.dimension_semantics<parallel>, #tpu.dimension_semantics<arbitrary>], iteration_bounds = array<i64: 2, 1>, scalar_prefetch = 0 : i64, scratch_operands = 1 : i64, tpu.core_type = #tpu.core_type<tc>, window_params = [{transform_indices = @transform_0, window_bounds = array<i64: 1, 1, 128>}, {transform_indices = @transform_1, window_bounds = array<i64: 1, 1, 128>}, {transform_indices = @transform_2, window_bounds = array<i64: 1, 4, 128>}, {transform_indices = @transform_3, window_bounds = array<i64: 1, 4, 256>}, {transform_indices = @transform_4, window_bounds = array<i64: 1, 2, 128>}]} {
    %c0_i32 = arith.constant 0 : i32
    %0 = arith.cmpi eq, %arg1, %c0_i32 : i32
    %1 = arith.extui %0 : i1 to i32
    %c0_i32_0 = arith.constant 0 : i32
    %2 = arith.cmpi ne, %1, %c0_i32_0 : i32
    scf.if %2 {
      %cst_12 = arith.constant 0.000000e+00 : f32
      %22 = vector.broadcast %cst_12 : f32 to vector<4x128xf32>
      %c0_13 = arith.constant 0 : index
      %c0_14 = arith.constant 0 : index
      %23 = vector.load %arg7[%c0_13, %c0_14] : memref<4x128xf32, #tpu.memory_space<vmem>>, vector<4x128xf32>
      tpu.vector_store %arg7[%c0_13, %c0_14], %22 {strides = array<i32>} : memref<4x128xf32, #tpu.memory_space<vmem>>, vector<4x128xf32>,
    } else {
    }
    %c256_i32 = arith.constant 256 : i32
    %3 = arith.muli %arg1, %c256_i32 : i32
    %4 = tpu.iota {dimensions = array<i32: 0>} : vector<256x128xi32>
    %5 = vector.broadcast %3 : i32 to vector<256x128xi32>
    %6 = arith.addi %4, %5 : vector<256x128xi32>
    %c0 = arith.constant 0 : index
    %c0_1 = arith.constant 0 : index
    %c0_2 = arith.constant 0 : index
    %7 = vector.load %arg2[%c0, %c0_1, %c0_2] : memref<1x1x128xi32, #tpu.memory_space<vmem>>, vector<1x1x128xi32>
    %8 = vector.shape_cast %7 : vector<1x1x128xi32> to vector<1x128xi32>
    %9 = vector.broadcast %8 : vector<1x128xi32> to vector<256x128xi32>
    %10 = arith.cmpi eq, %6, %9 : vector<256x128xi32>
    %11 = arith.extui %10 : vector<256x128xi1> to vector<256x128xi32>
    %12 = arith.sitofp %11 : vector<256x128xi32> to vector<256x128xf32>
    %c0_3 = arith.constant 0 : index
    %c0_4 = arith.constant 0 : index
    %c0_5 = arith.constant 0 : index
    %13 = vector.load %arg5[%c0_3, %c0_4, %c0_5] : memref<1x4x256xf32, #tpu.memory_space<vmem>>, vector<1x4x256xf32>
    %14 = vector.shape_cast %13 : vector<1x4x256xf32> to vector<4x256xf32>
    %c0_6 = arith.constant 0 : index
    %c0_7 = arith.constant 0 : index
    %15 = vector.load %arg7[%c0_6, %c0_7] : memref<4x128xf32, #tpu.memory_space<vmem>>, vector<4x128xf32>
    %cst = arith.constant dense<0.000000e+00> : vector<4x128xf32>
    %16 = tpu.matmul %14, %12, %cst {dimension_numbers = #tpu.dot_dimension_numbers<[1], [0], [0], [1], [0, 0, 1, 1], [], []>} : vector<4x256xf32>, vector<256x128xf32>, vector<4x128xf32> -> vector<4x128xf32>
    %17 = arith.addf %15, %16 : vector<4x128xf32>
    %c0_8 = arith.constant 0 : index
    %c0_9 = arith.constant 0 : index
    %18 = vector.load %arg7[%c0_8, %c0_9] : memref<4x128xf32, #tpu.memory_space<vmem>>, vector<4x128xf32>
    tpu.vector_store %arg7[%c0_8, %c0_9], %17 {strides = array<i32>} : memref<4x128xf32, #tpu.memory_space<vmem>>, vector<4x128xf32>,
    %c0_i32_10 = arith.constant 0 : i32
    %19 = arith.cmpi eq, %arg1, %c0_i32_10 : i32
    %20 = arith.extui %19 : i1 to i32
    %c0_i32_11 = arith.constant 0 : i32
    %21 = arith.cmpi ne, %20, %c0_i32_11 : i32
    scf.if %21 {
      %c0_12 = arith.constant 0 : index
      %c0_13 = arith.constant 0 : index
      %c0_14 = arith.constant 0 : index
      %22 = vector.load %arg3[%c0_12, %c0_13, %c0_14] : memref<1x1x128xf32, #tpu.memory_space<vmem>>, vector<1x1x128xf32>
      %23 = vector.shape_cast %22 : vector<1x1x128xf32> to vector<1x128xf32>
      %c0_15 = arith.constant 0 : index
      %c0_16 = arith.constant 0 : index
      %24 = vector.load %arg7[%c0_15, %c0_16] : memref<4x128xf32, #tpu.memory_space<vmem>>, vector<4x128xf32>
      %25 = vector.broadcast %23 : vector<1x128xf32> to vector<4x128xf32>
      %26 = arith.mulf %24, %25 : vector<4x128xf32>
      %c0_17 = arith.constant 0 : index
      %c0_18 = arith.constant 0 : index
      %c0_19 = arith.constant 0 : index
      %27 = vector.load %arg4[%c0_17, %c0_18, %c0_19] : memref<1x4x128xf32, #tpu.memory_space<vmem>>, vector<1x4x128xf32>
      %28 = vector.shape_cast %27 : vector<1x4x128xf32> to vector<4x128xf32>
      %29 = vector.broadcast %23 : vector<1x128xf32> to vector<4x128xf32>
      %30 = arith.mulf %28, %29 : vector<4x128xf32>
      %31 = arith.subf %26, %30 : vector<4x128xf32>
      %32 = math.absf %31 : vector<4x128xf32>
      %cst_20 = arith.constant 1.000000e+00 : f32
      %33 = vector.broadcast %cst_20 : f32 to vector<4x128xf32>
      %34 = arith.cmpf olt, %32, %33 : vector<4x128xf32>
      %cst_21 = arith.constant 5.000000e-01 : f32
      %35 = vector.broadcast %cst_21 : f32 to vector<4x128xf32>
      %36 = arith.mulf %35, %31 : vector<4x128xf32>
      %37 = arith.mulf %36, %31 : vector<4x128xf32>
      %cst_22 = arith.constant 5.000000e-01 : f32
      %38 = vector.broadcast %cst_22 : f32 to vector<4x128xf32>
      %39 = arith.subf %32, %38 : vector<4x128xf32>
      %40 = arith.select %34, %37, %39 : vector<4x128xi1>, vector<4x128xf32>
      %cst_23 = arith.constant dense<0.000000e+00> : vector<128xf32>
      %41 = vector.multi_reduction <add>, %40, %cst_23 [0] : vector<4x128xf32> to vector<128xf32>
      %42 = vector.shape_cast %41 : vector<128xf32> to vector<1x128xf32>
      %43 = tpu.concatenate %42, %23 in 0 : vector<1x128xf32>, vector<1x128xf32> -> vector<2x128xf32>
      %44 = vector.shape_cast %43 : vector<2x128xf32> to vector<1x2x128xf32>
      %c0_24 = arith.constant 0 : index
      %c0_25 = arith.constant 0 : index
      %c0_26 = arith.constant 0 : index
      %45 = vector.load %arg6[%c0_24, %c0_25, %c0_26] : memref<1x2x128xf32, #tpu.memory_space<vmem>>, vector<1x2x128xf32>
      tpu.vector_store %arg6[%c0_24, %c0_25, %c0_26], %44 {strides = array<i32>} : memref<1x2x128xf32, #tpu.memory_space<vmem>>, vector<1x2x128xf32>,
    } else {
    }
    return
  }
  func.func @transform_0(%arg0: i32, %arg1: i32) -> (i32, i32, i32) {
    %c0_i32 = arith.constant 0 : i32
    %c0_i32_0 = arith.constant 0 : i32
    %c0_i32_1 = arith.constant 0 : i32
    return %arg0, %c0_i32, %c0_i32_0 : i32, i32, i32
  }
  func.func @transform_1(%arg0: i32, %arg1: i32) -> (i32, i32, i32) {
    %c0_i32 = arith.constant 0 : i32
    %c0_i32_0 = arith.constant 0 : i32
    %c0_i32_1 = arith.constant 0 : i32
    return %arg0, %c0_i32, %c0_i32_0 : i32, i32, i32
  }
  func.func @transform_2(%arg0: i32, %arg1: i32) -> (i32, i32, i32) {
    %c0_i32 = arith.constant 0 : i32
    %c0_i32_0 = arith.constant 0 : i32
    %c0_i32_1 = arith.constant 0 : i32
    return %arg0, %c0_i32, %c0_i32_0 : i32, i32, i32
  }
  func.func @transform_3(%arg0: i32, %arg1: i32) -> (i32, i32, i32) {
    %c0_i32 = arith.constant 0 : i32
    %c0_i32_0 = arith.constant 0 : i32
    return %arg0, %c0_i32, %arg1 : i32, i32, i32
  }
  func.func @transform_4(%arg0: i32, %arg1: i32) -> (i32, i32, i32) {
    %c0_i32 = arith.constant 0 : i32
    %c0_i32_0 = arith.constant 0 : i32
    %c0_i32_1 = arith.constant 0 : i32
    return %arg0, %c0_i32, %c0_i32_0 : i32, i32, i32
  }
}

</mosaic_0001>

<bundles_post_ra>
// kernel: tpu_custom_call.1
= control target key start
LH: loop header
LB: loop body
LE: loop exit
PB: predicated region body
PF: predicated region fallthrough
CT: control target
= control target key end

     0   :  { %s1428_s0 = inlined_call_operand.hbm [shape: s32[2,1,128], index: 0, kind: input, shape index: {}]   ;;  %s1429_s1 = inlined_call_operand.hbm [shape: f32[2,1,128], index: 1, kind: input, shape index: {}]   ;;  %s1430_s2 = inlined_call_operand.hbm [shape: f32[2,4,128], index: 2, kind: input, shape index: {}]   ;;  %s1431_s3 = inlined_call_operand.hbm [shape: f32[2,4,256], index: 3, kind: input, shape index: {}]   ;;  %s1432_s4 = inlined_call_operand.hbm [shape: f32[2,2,128], index: 4, kind: output, shape index: {}]  }
   0x1   :  { %1437 = sst [smem:[#allocation20_spill]] %s1428_s0 }
   0x2   :  { %1438 = sst [smem:[#allocation21_spill]] %s1429_s1 }
   0x3   :  { %9 = vsyncpa [#allocation4], 0 }
   0x4   :  { %11 = vsyncpa [#allocation4 + $0x1], 0 }
   0x5   :  { %12 = vsyncpa [#allocation7], 0 }
   0x6   :  { %14 = vsyncpa [#allocation7 + $0x1], 0 }
   0x7   :  { %15 = vsyncpa [#allocation10], 0 }
   0x8   :  { %17 = vsyncpa [#allocation10 + $0x1], 0 }
   0x9   :  { %18 = vsyncpa [#allocation5], 0 }
   0xa   :  { %20 = vsyncpa [#allocation5 + $0x1], 0  ;;  %s1146_s15 = smov 0   ;;  %s1148_s16 = smov 0  }
   0xb   :  { %s1150_s17 = smov 0   ;;  %s1152_s18 = smov 0  }
   0xc   :  { %s1154_s19 = smov 0   ;;  %s1156_s20 = smov 0  }
   0xd LB: > { %1439 = sst [smem:[#allocation16_spill]] %s1105_s17  ;;  %s1177_s21 = sadd.s32 4294967295, %s1117_s20   ;;  %s1117_s20 = sphi %s1156_s20, %s26_s20   ;;  %s1113_s19 = sphi %s1154_s19, %s1458_s19   ;;  %s1109_s18 = sphi %s1152_s18, %s1457_s18   ;;  %s1105_s17 = sphi %s1150_s17, %s1453_s17   ;;  %s1101_s16 = sphi %s1148_s16, %s1456_s16   ;;  %s1097_s15 = sphi %s1146_s15, %s1455_s15  }
   0xe   : > { %1440 = sst [smem:[#allocation17_spill]] %s1117_s20  ;;  %s744_s22 = sadd.s32 4294967294, %s1117_s20  }
   0xf   : > { %s38_s23 = sadd.s32 1, %s1113_s19  ;;  %s45_s24 = sadd.s32 1, %s1105_s17 }
  0x10   : > { %p40_p0 = scmp.ge.s32.totalorder %s38_s23, 2  ;;  %p52_p1 = scmp.ne.s32.totalorder %s1105_s17, %s1101_s16 }
  0x11   : > { %p53_p2 = scmp.eq.s32.totalorder %s1117_s20, 0  ;;  %p58_p3 = scmp.ne.s32.totalorder %s1101_s16, %s1097_s15 }
  0x12   : > { %s1460_s23 = smov (%p40_p0, %s38_s23), 0  ;;  %p59_p5 = scmp.eq.s32.totalorder %s1177_s21, 0 }
  0x13   : > { %1441 = sst [smem:[#allocation18_spill]] %s1460_s23  ;;  %p1189_p4 = por %p53_p2, %p52_p1 }
  0x14   : > { %s42_s26 = ssub.s32 %s1113_s19, %s1460_s23  ;;  %p162_p6 = scmp.eq.s32.totalorder %s1177_s21, 1 }
  0x15   : > { %p43_p7 = scmp.eq.s32.totalorder %s42_s26, 0  ;;  %p1197_p8 = por %p59_p5, %p58_p3 }
  0x16   : > { %p1201_p9 = por %p162_p6, %p52_p1  ;;  %p168_p10 = scmp.eq.s32.totalorder %s744_s22, 1 }
  0x17   : > { %s1206_s29 = scalar_select %p43_p7, %s1105_s17, %s45_s24  }
  0x18   : > { %p1208_p11 = por %p168_p10, %p58_p3  ;;  %p746_p12 = scmp.ge.s32.totalorder %s1117_s20, 2 }
  0x19   : > { %1445 = sst [smem:[#allocation19_spill]] %s1206_s29  ;;  %p853_p13 = scmp.lt.s32.totalorder %s1117_s20, 2 }
  0x1a   : > { %s1215_s5 = sand.u32 1, %s1105_s17   ;;  %s205_s6 = sand.u32 1, %s1117_s20  }
  0x1b   : > { %p1220_p0 = pnand %p853_p13, %p1189_p4  ;;  %s1448_s1 = sld [smem:[#allocation21_spill]] }
  0x1c   : > { %s208_s11 = scalar_lea.vmem [#allocation6], %s1215_s5  ;;  %s206_s14 = scalar_lea.sflag [#allocation7], %s205_s6 }
  0x1d   : > { %s215_s12 = sshll.u32 %s208_s11, 4  ;;  %p752_p1 = scmp.ge.s32.totalorder %s1117_s20, 1  ;;  %s216_s12 = int_to_ptr.vmem [resolvable:$true] %s215_s12 }
  0x1e   : > { %p261_p2 = scmp.lt.s32.totalorder %s1117_s20, 3  ;;  %s1450_s0 = sld [smem:[#allocation20_spill]] }
  0x1f   : > { %s191_s9 = scalar_lea.vmem [#allocation3], %s1215_s5  ;;  %s189_s6 = scalar_lea.sflag [#allocation4], %s1215_s5 }
  0x20   : > { %p1233_p3 = pnand %p752_p1, %p261_p2  ;;  %s747_s11 = sshll.u32 %s1215_s5, 2 }
  0x21   : > { %s211_s10 = scalar_lea.hbm %s1448_s1, %s1113_s19  ;;  %s226_s25 = scalar_lea.vmem [#allocation8], %s747_s11 }
  0x22   : > { %s213_s13 = sshll.u32 %s211_s10, 4  ;;  %s198_s10 = sshll.u32 %s191_s9, 4  ;;  %s214_s13 = int_to_ptr.hbm [resolvable:$true] %s213_s13  ;;  %s199_s10 = int_to_ptr.vmem [resolvable:$true] %s198_s10 }
  0x23   : > { %842 = dma.hbm_to_vmem [thread:$0]  (!%p1220_p0), %s214_s13, 16, %s216_s12, %s206_s14  }
  0x24   : > { %s194_s26 = scalar_lea.hbm %s1450_s0, %s1113_s19  ;;  %s748_s12 = sshll.u32 %s1113_s19, 2 }
  0x25   : > { %s196_s8 = sshll.u32 %s194_s26, 4  ;;  %s230_s23 = scalar_lea.hbm %s1430_s2, %s748_s12  ;;  %s197_s8 = int_to_ptr.hbm [resolvable:$true] %s196_s8 }
  0x26   : > { %839 = dma.hbm_to_vmem [thread:$0]  (!%p1220_p0), %s197_s8, 16, %s199_s10, %s189_s6  }
  0x27   : > { %s232_s24 = sshll.u32 %s230_s23, 4  ;;  %s234_s26 = sshll.u32 %s226_s25, 4  ;;  %s233_s24 = int_to_ptr.hbm [resolvable:$true] %s232_s24  ;;  %s235_s26 = int_to_ptr.vmem [resolvable:$true] %s234_s26 }
  0x28   : > { %845 = dma.hbm_to_vmem [thread:$0]  (!%p1220_p0), %s233_s24, 64, %s235_s26, %s206_s14  }
  0x29   : > { %s749_s9 = sshll.u32 %s1215_s5, 3  ;;  %s825_s0 = sshll.u32 %s1113_s19, 3 }
  0x2a   : > { %s252_s8 = scalar_lea.hbm %s1431_s3, %s825_s0  ;;  %s245_s10 = scalar_lea.vmem [#allocation9], %s749_s9 }
  0x2b   : > { %s256_s6 = sshll.u32 %s245_s10, 4  ;;  %s254_s20 = sshll.u32 %s252_s8, 4  ;;  %s257_s6 = int_to_ptr.vmem [resolvable:$true] %s256_s6  ;;  %s255_s20 = int_to_ptr.hbm [resolvable:$true] %s254_s20 }
  0x2c   : > { %s242_s1 = scalar_lea.sflag [#allocation10], %s1215_s5  ;;  %265 = sbr.rel (%p1233_p3) target bundleno = 259 (0x103), region = 36 }
  0x2d   : > { %848 = dma.hbm_to_vmem [thread:$0]  (!%p1220_p0), %s255_s20, 128, %s257_s6, %s242_s1  }
  0x2e   : > { %s1263_s23 = sand.u32 (!%p1233_p3), 1, %s1101_s16  }
  0x2f   : > { %s268_s14 = scalar_lea.sflag (!%p1233_p3), [#allocation4], %s1263_s23  ;;  %s270_s17 = scalar_lea.vmem (!%p1233_p3), [#allocation3], %s1263_s23 }
  0x31   : > { %1080 = dma.done.wait (%p1197_p8), %s268_s14, 16  }
  0x32   : > { %1082 = vsyncadd (%p1197_p8), %s268_s14, 4294967280  ;;  %s276_s0 = sand.u32 1, %s1177_s21   ;;  %s279_s29 = scalar_lea.vmem [#allocation6], %s1263_s23 }
  0x33   : > { %s277_s20 = scalar_lea.sflag [#allocation7], %s276_s0 }
  0x34   : > { %1084 = dma.done.wait (%p1197_p8), %s277_s20, 80  }
  0x35   : > { %1086 = vsyncadd (%p1197_p8), %s277_s20, 4294967216  ;;  %s753_s5 = sshll.u32 %s1263_s23, 2  ;;  %s754_s7 = sshll.u32 %s1263_s23, 3 }
  0x36   : > { %s1279_s22 = scalar_lea.vmem [#allocation8], %s753_s5  ;;  %s296_s11 = scalar_lea.sflag [#allocation10], %s1263_s23 }
  0x37   : > { %s299_s12 = scalar_lea.vmem [#allocation9], %s754_s7 }
  0x38   : > { %1088 = dma.done.wait (%p1197_p8), %s296_s11, 128  }
  0x39   : > { %1090 = vsyncadd (%p1197_p8), %s296_s11, 4294967168  ;;  %v345_v0 = vlaneseq  ;;  %v1292_v6 = vld [vmem:[%s270_s17] ss:$0 sm:$0xff]  ;;  %v1119_v12 = vmov 1.0   ;;  %v1120_v38 = vmov 0.0   ;;  %s755_s21 = sshll.u32 %s1263_s23, 1 }
  0x3a   : > { %v509_v11 = vld [vmem:[%s299_s12] sm:$0xff]  ;;  %343 = vst [vmem:[#allocation2] sm:$0xf] %v1120_v38  ;;  %v568_v45 = vld [vmem:[%s1279_s22] sm:$0xf]  ;;  %s822_s27 = sshll.u32 %s1109_s18, 1 }
  0x3b   : > { %v1286_v1 = vshrl.u32 %v345_v0, 7  ;;  %512 = vst [vmem:[#allocation1] ss:$2 sm:$0xff] %v509_v11  ;;  %v906_v44 = vld [vmem:[%s279_s29] ss:$0 sm:$0xff]  ;;  %s599_s25 = scalar_lea.hbm %s1432_s4, %s822_s27  ;;  %s337_s26 = scalar_lea.vmem [#allocation11], %s755_s21 }
  0x3c   : > { %v569_v46 = vmul.f32 %v906_v44, %v568_v45  ;;  %s601_s9 = sshll.u32 %s337_s26, 4  ;;  %s603_s8 = sshll.u32 %s599_s25, 4  ;;  %s602_s9 = int_to_ptr.vmem [resolvable:$true] %s601_s9  ;;  %s604_s8 = int_to_ptr.hbm [resolvable:$true] %s603_s8 }
  0x3d   : > { %v361_v2 = vadd.s32 120, %v1286_v1  ;;  %v377_v3 = vadd.s32 248, %v1286_v1  ;;  %v360_v4 = vadd.s32 112, %v1286_v1  ;;  %v376_v5 = vadd.s32 240, %v1286_v1  ;;  %s589_s10 = scalar_lea.sflag [#allocation5], %s1263_s23  ;;  %s1041_s6 = sshra.s32 %s604_s8, 4  ;;  %s1042_s6 = int_to_ptr.hbm [resolvable:$true] %s1041_s6 }
  0x3e   : > { %v359_v7 = vadd.s32 104, %v1286_v1  ;;  %v375_v8 = vadd.s32 232, %v1286_v1  ;;  %v358_v9 = vadd.s32 96, %v1286_v1  ;;  %v374_v10 = vadd.s32 224, %v1286_v1  ;;  %s1043_s18 = scalar_lea.hbm %s1042_s6, 2  ;;  %s1047_s17 = scalar_lea.hbm %s1432_s4, 4 }
  0x3f   : > { %vm428_vm0 = vcmp.eq.s32.totalorder %v361_v2, %v1292_v6  ;;  %vm444_vm1 = vcmp.eq.s32.totalorder %v377_v3, %v1292_v6  ;;  %vm427_vm2 = vcmp.eq.s32.totalorder %v360_v4, %v1292_v6  ;;  %vm443_vm3 = vcmp.eq.s32.totalorder %v376_v5, %v1292_v6  ;;  %p1044_p4 = scmp.ne.s32.totalorder %s1042_s6, %s1043_s18  ;;  %p1048_p7 = scmp.lt.s32.totalorder %s1042_s6, %s1432_s4 }
  0x40   : > { %788 = vmatpush.msk.msra.mxu0 %vm428_vm0, %v1119_v12  ;;  %804 = vmatpush.msk.msra.mxu1 %vm444_vm1, %v1119_v12  ;;  %vm426_vm4 = vcmp.eq.s32.totalorder %v359_v7, %v1292_v6  ;;  %vm442_vm5 = vcmp.eq.s32.totalorder %v375_v8, %v1292_v6  ;;  %v357_v13 = vadd.s32 88, %v1286_v1  ;;  %v373_v14 = vadd.s32 216, %v1286_v1  ;;  %p1049_p8 = scmp.lt.s32.totalorder %s1047_s17, %s1043_s18 }
  0x41   : > { %vm425_vm6 = vcmp.eq.s32.totalorder %v358_v9, %v1292_v6  ;;  %vm441_vm7 = vcmp.eq.s32.totalorder %v374_v10, %v1292_v6  ;;  %v356_v15 = vadd.s32 80, %v1286_v1  ;;  %v372_v16 = vadd.s32 208, %v1286_v1  ;;  %v510_v40 = vld [vmem:[#allocation2] sm:$0xf]  ;;  %p1045_p5 = pnand %p1044_p4, %p1201_p9 }
  0x42   : > { %789 = vmatpush.msk.msra.mxu0 %vm427_vm2, %v1119_v12  ;;  %805 = vmatpush.msk.msra.mxu1 %vm443_vm3, %v1119_v12  ;;  %vm424_vm8 = vcmp.eq.s32.totalorder %v357_v13, %v1292_v6  ;;  %vm440_vm9 = vcmp.eq.s32.totalorder %v373_v14, %v1292_v6  ;;  %v355_v17 = vadd.s32 72, %v1286_v1  ;;  %v371_v18 = vadd.s32 200, %v1286_v1  ;;  %v513_v36 = vld.sshfl [vmem:[#allocation1] sm:$0xff pattern:$0x75316420]  ;;  %p1050_p10 = por %p1049_p8, %p1048_p7 }
  0x43   : > { %vm423_vm10 = vcmp.eq.s32.totalorder %v356_v15, %v1292_v6  ;;  %vm439_vm11 = vcmp.eq.s32.totalorder %v372_v16, %v1292_v6  ;;  %v354_v19 = vadd.s32 64, %v1286_v1  ;;  %v370_v20 = vadd.s32 192, %v1286_v1  ;;  %v514_v37 = vld.sshfl [vmem:[#allocation1 + $0x8] sm:$0xff pattern:$0x75316420]  ;;  %p1046_p6 = pneg %p1045_p5 }
  0x44   : > { %790 = vmatpush.msk.msra.mxu0 %vm426_vm4, %v1119_v12  ;;  %806 = vmatpush.msk.msra.mxu1 %vm442_vm5, %v1119_v12  ;;  %vm422_vm12 = vcmp.eq.s32.totalorder %v355_v17, %v1292_v6  ;;  %vm438_vm13 = vcmp.eq.s32.totalorder %v371_v18, %v1292_v6  ;;  %v353_v21 = vadd.s32 56, %v1286_v1  ;;  %v369_v22 = vadd.s32 184, %v1286_v1 }
  0x45   : > { %vm421_vm14 = vcmp.eq.s32.totalorder %v354_v19, %v1292_v6  ;;  %vm437_vm15 = vcmp.eq.s32.totalorder %v370_v20, %v1292_v6  ;;  %v352_v23 = vadd.s32 48, %v1286_v1  ;;  %v368_v24 = vadd.s32 176, %v1286_v1  ;;  %p1051_p13 = pnand %p1050_p10, %p1046_p6 }
  0x46   : > { %791 = vmatpush.msk.msra.mxu0 %vm425_vm6, %v1119_v12  ;;  %807 = vmatpush.msk.msra.mxu1 %vm441_vm7, %v1119_v12  ;;  %vm420_vm0 = vcmp.eq.s32.totalorder %v353_v21, %v1292_v6  ;;  %vm436_vm1 = vcmp.eq.s32.totalorder %v369_v22, %v1292_v6  ;;  %v351_v25 = vadd.s32 40, %v1286_v1  ;;  %v367_v26 = vadd.s32 168, %v1286_v1 }
  0x47   : > { %vm419_vm2 = vcmp.eq.s32.totalorder %v352_v23, %v1292_v6  ;;  %vm435_vm3 = vcmp.eq.s32.totalorder %v368_v24, %v1292_v6  ;;  %v350_v27 = vadd.s32 32, %v1286_v1  ;;  %v366_v28 = vadd.s32 160, %v1286_v1 }
  0x48   : > { %792 = vmatpush.msk.msra.mxu0 %vm424_vm8, %v1119_v12  ;;  %808 = vmatpush.msk.msra.mxu1 %vm440_vm9, %v1119_v12  ;;  %vm418_vm4 = vcmp.eq.s32.totalorder %v351_v25, %v1292_v6  ;;  %vm434_vm5 = vcmp.eq.s32.totalorder %v367_v26, %v1292_v6  ;;  %v349_v29 = vadd.s32 24, %v1286_v1  ;;  %v365_v30 = vadd.s32 152, %v1286_v1 }
  0x49   : > { %vm417_vm6 = vcmp.eq.s32.totalorder %v350_v27, %v1292_v6  ;;  %vm433_vm7 = vcmp.eq.s32.totalorder %v366_v28, %v1292_v6  ;;  %v348_v31 = vadd.s32 16, %v1286_v1  ;;  %v364_v32 = vadd.s32 144, %v1286_v1 }
  0x4a   : > { %793 = vmatpush.msk.msra.mxu0 %vm423_vm10, %v1119_v12  ;;  %809 = vmatpush.msk.msra.mxu1 %vm439_vm11, %v1119_v12  ;;  %vm416_vm8 = vcmp.eq.s32.totalorder %v349_v29, %v1292_v6  ;;  %vm432_vm9 = vcmp.eq.s32.totalorder %v365_v30, %v1292_v6  ;;  %v347_v33 = vadd.s32 8, %v1286_v1  ;;  %v363_v34 = vadd.s32 136, %v1286_v1 }
  0x4b   : > { %vm415_vm10 = vcmp.eq.s32.totalorder %v348_v31, %v1292_v6  ;;  %vm431_vm11 = vcmp.eq.s32.totalorder %v364_v32, %v1292_v6  ;;  %v362_v35 = vadd.s32 128, %v1286_v1 }
  0x4c   : > { %794 = vmatpush.msk.msra.mxu0 %vm422_vm12, %v1119_v12  ;;  %810 = vmatpush.msk.msra.mxu1 %vm438_vm13, %v1119_v12  ;;  %vm414_vm12 = vcmp.eq.s32.totalorder %v347_v33, %v1292_v6  ;;  %vm430_vm13 = vcmp.eq.s32.totalorder %v363_v34, %v1292_v6 }
  0x4e   : > { %795 = vmatpush.msk.msra.mxu0 %vm421_vm14, %v1119_v12  ;;  %811 = vmatpush.msk.msra.mxu1 %vm437_vm15, %v1119_v12  ;;  %vm413_vm14 = vcmp.eq.s32.totalorder %v1286_v1, %v1292_v6  ;;  %vm429_vm15 = vcmp.eq.s32.totalorder %v362_v35, %v1292_v6 }
  0x50   : > { %796 = vmatpush.msk.msra.mxu0 %vm420_vm0, %v1119_v12  ;;  %812 = vmatpush.msk.msra.mxu1 %vm436_vm1, %v1119_v12  ;;  %vm577_vm1 = vcmask 1043456  }
  0x52   : > { %797 = vmatpush.msk.msra.mxu0 %vm419_vm2, %v1119_v12  ;;  %813 = vmatpush.msk.msra.mxu1 %vm435_vm3, %v1119_v12  ;;  %vm585_vm2 = vcmask 1040384  }
  0x54   : > { %798 = vmatpush.msk.msra.mxu0 %vm418_vm4, %v1119_v12  ;;  %814 = vmatpush.msk.msra.mxu1 %vm434_vm5, %v1119_v12 }
  0x56   : > { %799 = vmatpush.msk.msra.mxu0 %vm417_vm6, %v1119_v12  ;;  %815 = vmatpush.msk.msra.mxu1 %vm433_vm7, %v1119_v12 }
  0x58   : > { %800 = vmatpush.msk.msra.mxu0 %vm416_vm8, %v1119_v12  ;;  %816 = vmatpush.msk.msra.mxu1 %vm432_vm9, %v1119_v12 }
  0x5a   : > { %801 = vmatpush.msk.msra.mxu0 %vm415_vm10, %v1119_v12  ;;  %817 = vmatpush.msk.msra.mxu1 %vm431_vm11, %v1119_v12 }
  0x5c   : > { %802 = vmatpush.msk.msra.mxu0 %vm414_vm12, %v1119_v12  ;;  %818 = vmatpush.msk.msra.mxu1 %vm430_vm13, %v1119_v12 }
  0x5e   : > { %803 = vmatpush.msk.msra.mxu0 %vm413_vm14, %v1119_v12  ;;  %819 = vmatpush.msk.msra.mxu1 %vm429_vm15, %v1119_v12 }
  0x5f   : > { %533 = vmatmul.f32.vlgmr.msra.gmra.mxu0 %v513_v36  ;;  %553 = vmatmul.f32.vlgmr.msra.gmra.mxu1 %v514_v37 }
  0xdc   : > { %v534_v39 = vpop.f32.mrf.mxu0  ;;  %v554_v41 = vpop.f32.mrf.mxu1 }
  0xdd   : > { %v555_v42 = vadd.f32 %v554_v41, %v534_v39 }
  0xdf   : > { %v557_v43 = vadd.f32 %v555_v42, %v510_v40 }
  0xe1   : > { %558 = vst [vmem:[#allocation2] sm:$0xf] %v557_v43 }
  0xe8   : > { %v563_v47 = vld [vmem:[#allocation2] sm:$0xf] }
  0xe9   : > { %v567_v48 = vmul.f32 %v906_v44, %v563_v47 }
  0xeb   : > { %v570_v49 = vsub.f32 %v567_v48, %v569_v46 }
  0xed   : > { %v571_v50 = vand.u32 2147483647, %v570_v49  ;;  %v573_v51 = vmul.f32 0.5, %v570_v49 }
  0xef   : > { %vm572_vm0 = vcmp.lt.f32.partialorder %v571_v50, 1.0  ;;  %v574_v52 = vmul.f32 %v573_v51, %v570_v49  ;;  %v820_v53 = vadd.f32 -0.5, %v571_v50 }
  0xf1   : > { %v576_v54 = vsel %vm572_vm0, %v574_v52, %v820_v53 }
  0xf2   : > { %v578_v55 = vsel %vm577_vm1, %v576_v54, 0.0 }
  0xf3   : > { %v579_v56 = vrot.slane %v578_v55, 4 }
  0xf5   : > { %v580_v57 = vadd.f32 %v579_v56, %v578_v55 }
  0xf7   : > { %v581_v58 = vrot.slane %v580_v57, 2 }
  0xf9   : > { %v582_v59 = vadd.f32 %v581_v58, %v580_v57 }
  0xfb   : > { %v583_v60 = vrot.slane %v582_v59, 1 }
  0xfd   : > { %v584_v61 = vadd.f32 %v583_v60, %v582_v59 }
  0xff   : > { %v586_v62 = vsel %vm585_vm2, %v584_v61, %v906_v44 }
 0x100   : > { %587 = vst [vmem:[%s337_s26] sm:$0x3] %v586_v62 }
 0x101   : > { %1054 = shalt.err (!%p1051_p13)
}
 0x102   : > { %834 = dma.vmem_to_hbm [thread:$0]  (%p1201_p9), %s602_s9, 32, %s604_s8, %s589_s10  }
 0x103 PF: > { %s1451_s23 = sld [smem:[#allocation17_spill]]  ;;  %s615_s29 = sand.u32 1, %s1097_s15  }
 0x104   : > { %p850_p0 = pnand %p746_p12, %p1208_p11  ;;  %s616_s5 = scalar_lea.sflag [#allocation5], %s615_s29 }
 0x106   : > { %p851_p1 = pneg %p850_p0 }
 0x108   : > { %1092 = dma.done.wait (%p851_p1), %s616_s5, 32  }
 0x109   : > { %1094 = vsyncadd (%p851_p1), %s616_s5, 4294967264  ;;  %s26_s20 = sadd.s32 1, %s1451_s23   ;;  %s1452_s7 = sld [smem:[#allocation16_spill]] }
 0x10a   : > { %p23_p2 = scmp.ge.s32.totalorder %s26_s20, 4   ;;  %s1453_s17 = sld [smem:[#allocation19_spill]] }
 0x10b   : > { %s1454_s28 = sld [smem:[#allocation18_spill]]  ;;  %s1455_s15 = smov %s1101_s16 }
 0x10c   : > { %s1457_s18 = smov %s1113_s19 }
 0x10d   :  { %25 = sbr.rel (!%p23_p2) target bundleno = 13 (0xd), region = 126 }
 0x10f   : > { %s1456_s16 = smov %s1452_s7 }
 0x111   : > { %s1458_s19 = smov %s1454_s28 }
 0x112   :  { %622 = vsyncpa [#allocation4], 1 }
 0x113   :  { %624 = vsyncpa [#allocation4 + $0x1], 1 }
 0x114   :  { %625 = vsyncpa [#allocation7], 1 }
 0x115   :  { %627 = vsyncpa [#allocation7 + $0x1], 1 }
 0x116   :  { %628 = vsyncpa [#allocation10], 1 }
 0x117   :  { %630 = vsyncpa [#allocation10 + $0x1], 1 }
 0x118   :  { %631 = vsyncpa [#allocation5], 1 }
 0x119   :  { %633 = vsyncpa [#allocation5 + $0x1], 1 }

</bundles_post_ra>
